<compile_context>
chip_gen: v7x
topology: tpu7x:2x2x1
jax: 0.10.0
libtpu: 0.0.40
codegen_flags: <defaults>
</compile_context>

<pallas_src>
import functools
import math

import jax
import jax.numpy as jnp
import numpy as np
from jax.experimental import pallas as pl
from jax.experimental.pallas import tpu as pltpu


_INNER_UNROLL_MAX = 8   # statically unroll the per-p-group loop up to this trip count


# ---------------------------------------------------------------------------
# Kernel: one output tile = (cheb @ x_tile) -> per-p-group channel mix -> +bias.
# ---------------------------------------------------------------------------
def _chebconv_kernel(x_ref, cheb_ref, wblk_ref, bias_ref, o_ref, y_ref, *,
                     c_in, N1, g, n_inner, compute_dtype):
    # ---- dot 1 (MXU): (V, V*Ks) @ (V*Ks, PW*c_in) -> (V, PW*c_in), f32 accumulation.
    # The (optional) bf16 cast of x happens here, in-register, so the wrapper never
    # makes an extra HBM pass over x.
    xv = x_ref[...].astype(compute_dtype)
    y_ref[...] = jnp.dot(cheb_ref[...], xv, preferred_element_type=jnp.float32)

    # ---- dot 2: block-diagonal channel / Chebyshev-order mix, applied per MINIMAL
    # lane-aligned p-group of size g (g*N1 % 128 == 0, so every store is lane-dense
    # and aligned).  The f32 dot-1 result is used directly (no re-rounding).
    gc_in = g * c_in
    gN1 = g * N1
    wblk = wblk_ref[...]            # (g*c_in, g*N1) f32, tiny & tile-width independent
    bias = bias_ref[...]            # (1, g*N1) f32

    def one_group(off_in, off_out):
        y_j = y_ref[:, pl.ds(off_in, gc_in)]
        o_j = jnp.dot(y_j, wblk, preferred_element_type=jnp.float32)
        o_ref[:, pl.ds(off_out, gN1)] = (o_j + bias).astype(o_ref.dtype)

    if n_inner <= _INNER_UNROLL_MAX:
        for j in range(n_inner):                       # static unroll (LLO visibility)
            one_group(j * gc_in, j * gN1)
    else:
        def body(j, carry):                            # long-tile path: rolled loop
            one_group(j * gc_in, pl.multiple_of(j * gN1, 128))
            return carry
        jax.lax.fori_loop(0, n_inner, body, 0)


# ---------------------------------------------------------------------------
# VMEM-budget-aware tile chooser.
# ---------------------------------------------------------------------------
def _vmem_bytes_per_step(pw, *, V, Ks, c_in, N1, g, x_itemsize, out_itemsize):
    """Estimated VMEM for one grid step, including double-buffered pipelined blocks."""
    x_blk = (V * Ks) * (pw * c_in) * x_itemsize * 2     # pipelined input, 2 buffers
    o_blk = V * (pw * N1) * out_itemsize * 2            # pipelined output, 2 buffers
    y_scr = V * (pw * c_in) * 4                         # f32 scratch, single buffer
    resident = (V * (Ks * V) + (g * c_in) * (g * N1) + g * N1) * 4 * 2
    return x_blk + o_blk + y_scr + resident


def _choose_p_tile(PT, *, V, Ks, c_in, N1, g, x_itemsize, out_itemsize,
                   vmem_budget_bytes, max_out_lanes):
    # Legal tile widths: multiples of g that divide PT and keep the x block lane-dense
    # (pw*c_in % 128 == 0) or cover the full extent.  pw == PT always qualifies.
    cands = [pw for pw in range(g, PT + 1, g)
             if PT % pw == 0 and ((pw * c_in) % 128 == 0 or pw == PT)]
    feasible = [pw for pw in cands
                if _vmem_bytes_per_step(pw, V=V, Ks=Ks, c_in=c_in, N1=N1, g=g,
                                        x_itemsize=x_itemsize,
                                        out_itemsize=out_itemsize) <= vmem_budget_bytes]
    if not feasible:
        # Graceful degradation: smallest legal tile instead of a full-extent block
        # that would blow past the (v7x 64 MiB) VMEM budget at compile time.
        return min(cands)
    # Big lane-dense tiles amortize the ~0.35us/step pipeline overhead, but cap the
    # output width so small-V problems don't grab the whole budget for no gain.
    capped = [pw for pw in feasible if pw * N1 <= max_out_lanes] or [min(feasible)]
    pw = max(capped)
    # Mild preference for an even number of grid steps (v7x megacore load balance).
    n_tiles = PT // pw
    if n_tiles > 1 and n_tiles % 2 == 1:
        even = [p for p in capped if (PT // p) % 2 == 0 and 2 * p >= pw]
        if even:
            pw = max(even)
    return pw


# ---------------------------------------------------------------------------
# ChebConv forward wrapper.
# ---------------------------------------------------------------------------
def chebconv_forward(x, weight, bias, cheb_matrix, *,
                     compute_dtype=jnp.float32, out_dtype=jnp.float32,
                     vmem_budget_bytes=24 * 1024 * 1024,
                     max_out_lanes=32 * 1024):
    """Faithful ChebConv.forward: returns (B*T*V, c_out) like the PyTorch module."""
    B, c_in, T, V = x.shape
    Ks, w_cin, c_out = weight.shape
    assert w_cin == c_in
    assert cheb_matrix.shape == (V, Ks * V)

    if (B * T) % Ks != 0:
        # TODO(synk): when Ks does not divide B*T the flat reinterpretation makes the
        # column tiles ragged across rows of x_first; not implemented here.
        raise NotImplementedError("fused ChebConv kernel requires Ks | (batch * T)")

    PT = (B * T) // Ks             # number of p-column groups in x_first / out2d
    N1 = Ks * c_out                # width of one p-group in out2d
    g = 128 // math.gcd(N1, 128)   # minimal p-group giving lane-aligned (x128) stores
    if PT % g != 0:
        # TODO(synk): ragged trailing p-group (PT not a multiple of the minimal
        # lane-aligned group) would need masked edge handling; not implemented.
        raise NotImplementedError(
            "fused ChebConv kernel requires (128 / gcd(Ks*c_out, 128)) | (B*T/Ks)")

    PW = _choose_p_tile(PT, V=V, Ks=Ks, c_in=c_in, N1=N1, g=g,
                        x_itemsize=x.dtype.itemsize,
                        out_itemsize=np.dtype(out_dtype).itemsize,
                        vmem_budget_bytes=vmem_budget_bytes,
                        max_out_lanes=max_out_lanes)
    n_tiles = PT // PW
    n_inner = PW // g

    # Pure flat reinterpretations (free).  x is NOT cast here: the bf16 cast (if any)
    # happens in-register inside the kernel, avoiding an extra HBM pass over x.
    xr = x.reshape(V * Ks, PT * c_in)                          # (V*Ks, PT*c_in)
    w2d = weight.reshape(c_in, N1).astype(jnp.float32)         # (c_in, Ks*c_out)
    # Minimal block-diagonal mixing weight: constant (g*c_in, g*N1), independent of PW.
    wblk = jnp.kron(jnp.eye(g, dtype=jnp.float32), w2d)
    cheb = cheb_matrix.astype(compute_dtype)                   # small: (V, Ks*V)
    if bias is None:
        bias = jnp.zeros((c_out,), jnp.float32)
    bias_row = jnp.tile(bias.astype(jnp.float32), g * Ks).reshape(1, g * N1)

    kernel = functools.partial(_chebconv_kernel, c_in=c_in, N1=N1, g=g,
                               n_inner=n_inner, compute_dtype=compute_dtype)

    out2d = pl.pallas_call(
        kernel,
        out_shape=jax.ShapeDtypeStruct((V, PT * N1), out_dtype),
        grid_spec=pltpu.PrefetchScalarGridSpec(
            num_scalar_prefetch=0,
            grid=(n_tiles,),
            in_specs=[
                # x tile: lane-dense column slab, pipelined (double-buffered) over grid.
                pl.BlockSpec((V * Ks, PW * c_in), lambda i: (0, i)),
                # Resident operands (constant index maps).  All tiny now (the
                # block-diagonal weight no longer scales with the tile width), so the
                # default double-buffering costs < ~1 MB and single-buffering is moot.
                pl.BlockSpec((V, Ks * V), lambda i: (0, 0)),
                pl.BlockSpec((g * c_in, g * N1), lambda i: (0, 0)),
                pl.BlockSpec((1, g * N1), lambda i: (0, 0)),
            ],
            out_specs=pl.BlockSpec((V, PW * N1), lambda i: (0, i)),
            scratch_shapes=[pltpu.VMEM((V, PW * c_in), jnp.float32)],
        ),
        compiler_params=pltpu.CompilerParams(
            dimension_semantics=("parallel",),      # megacore sharding on v7x
            vmem_limit_bytes=40 * 1024 * 1024,      # > chooser budget, < v7x 64 MiB
        ),
    )(xr, cheb, wblk, bias_row)

    # Final flat reinterpretation, exactly like the module's .reshape(-1, c_out).
    return out2d.reshape(-1, c_out)


# ---------------------------------------------------------------------------
# Pure-JAX reference (literal translation of the PyTorch forward).
# ---------------------------------------------------------------------------
def chebconv_reference(x, weight, bias, cheb_matrix):
    B, c_in, T, V = x.shape
    Ks, _, c_out = weight.shape
    x_first = (x.reshape(-1, c_in) @ weight.reshape(c_in, -1)).reshape(V * Ks, -1)
    x_second = (cheb_matrix @ x_first).reshape(-1, c_out)
    return x_second + bias if bias is not None else x_second


# ---------------------------------------------------------------------------
if __name__ == "__main__":
    # Small deterministic setup (Ks | B*T and g | B*T/Ks hold for these shapes).
    B, c_in, c_out = 4, 4, 8
    T_steps, n_vertex, Ks = 48, 16, 3

    key = jax.random.PRNGKey(0)
    k_w, k_b, k_x = jax.random.split(key, 3)

    # ChebConv weight: (Ks, c_in, c_out), kaiming-uniform-style bound.
    fan_in = c_in * c_out
    bound_w = math.sqrt(2.0) * math.sqrt(3.0 / fan_in)
    weight = jax.random.uniform(k_w, (Ks, c_in, c_out), jnp.float32, -bound_w, bound_w)
    # bias: uniform(-1/sqrt(c_out), 1/sqrt(c_out)).
    stdv_b = 1.0 / math.sqrt(c_out)
    bias = jax.random.uniform(k_b, (c_out,), jnp.float32, -stdv_b, stdv_b)

    # Deterministic Chebyshev polynomial stack for a ring graph: (V, Ks*V).
    V = n_vertex
    eye = jnp.eye(V, dtype=jnp.float32)
    A = jnp.roll(eye, 1, axis=1) + jnp.roll(eye, -1, axis=1)
    d_inv_sqrt = jnp.diag(1.0 / jnp.sqrt(A.sum(axis=1)))
    L_tilde = (eye - d_inv_sqrt @ A @ d_inv_sqrt) - eye
    cheb_list = [eye, L_tilde]
    for _ in range(2, Ks):
        cheb_list.append(2.0 * L_tilde @ cheb_list[-1] - cheb_list[-2])
    cheb_matrix = jnp.concatenate(cheb_list[:Ks], axis=1)       # (V, Ks*V)

    # Input in NCHW = (batch, c_in, T, n_vertex).
    x = jax.random.normal(k_x, (B, c_in, T_steps, n_vertex), jnp.float32)

    ref = chebconv_reference(x, weight, bias, cheb_matrix)

    # --- f32, single large lane-dense tile (1 grid step) -----------------------
    out = jax.block_until_ready(chebconv_forward(x, weight, bias, cheb_matrix))
    assert out.shape == (B * T_steps * n_vertex, c_out)
    assert jnp.allclose(out, ref, atol=1e-4, rtol=1e-4)

    # --- f32, forced multi-tile (2 grid steps) to exercise the pipelined path --
    out_mt = jax.block_until_ready(
        chebconv_forward(x, weight, bias, cheb_matrix, max_out_lanes=768))
    assert jnp.allclose(out_mt, ref, atol=1e-4, rtol=1e-4)

    # --- bf16 MXU operands for dot-1 (x cast in-kernel), f32 dot-2 & epilogue ---
    ref_b = chebconv_reference(
        x.astype(jnp.bfloat16).astype(jnp.float32), weight, bias,
        cheb_matrix.astype(jnp.bfloat16).astype(jnp.float32))
    out_b = jax.block_until_ready(
        chebconv_forward(x, weight, bias, cheb_matrix, compute_dtype=jnp.bfloat16))
    assert jnp.allclose(out_b, ref_b, atol=1e-3, rtol=1e-3)

    # --- bf16 output (f32 epilogue math, halves output write traffic) ----------
    out_b16 = jax.block_until_ready(
        chebconv_forward(x, weight, bias, cheb_matrix,
                         compute_dtype=jnp.bfloat16, out_dtype=jnp.bfloat16))
    assert jnp.allclose(out_b16.astype(jnp.float32), ref_b, atol=5e-2, rtol=5e-2)

    print("KERNEL_OK")
</pallas_src>

<mosaic_0001>
module attributes {stable_mosaic.version = 11 : i64} {
  func.func @_chebconv_kernel(%arg0: i32, %arg1: memref<48x256xf32, #tpu.memory_space<vmem>>, %arg2: memref<16x48xf32, #tpu.memory_space<vmem>>, %arg3: memref<64x384xf32, #tpu.memory_space<vmem>>, %arg4: memref<1x384xf32, #tpu.memory_space<vmem>>, %arg5: memref<16x1536xf32, #tpu.memory_space<vmem>>, %arg6: memref<16x256xf32, #tpu.memory_space<vmem>>) attributes {dimension_semantics = [#tpu.dimension_semantics<parallel>], iteration_bounds = array<i64: 1>, scalar_prefetch = 0 : i64, scratch_operands = 1 : i64, tpu.core_type = #tpu.core_type<tc>, window_params = [{transform_indices = @transform_0, window_bounds = array<i64: 48, 256>}, {pipeline_mode = #tpu.pipeline_mode<synchronous>, transform_indices = @transform_1, window_bounds = array<i64: 16, 48>}, {pipeline_mode = #tpu.pipeline_mode<synchronous>, transform_indices = @transform_2, window_bounds = array<i64: 64, 384>}, {pipeline_mode = #tpu.pipeline_mode<synchronous>, transform_indices = @transform_3, window_bounds = array<i64: 1, 384>}, {transform_indices = @transform_4, window_bounds = array<i64: 16, 1536>}]} {
    %c0 = arith.constant 0 : index
    %c0_0 = arith.constant 0 : index
    %0 = vector.load %arg1[%c0, %c0_0] : memref<48x256xf32, #tpu.memory_space<vmem>>, vector<48x256xf32>
    %c0_1 = arith.constant 0 : index
    %c0_2 = arith.constant 0 : index
    %1 = vector.load %arg2[%c0_1, %c0_2] : memref<16x48xf32, #tpu.memory_space<vmem>>, vector<16x48xf32>
    %cst = arith.constant dense<0.000000e+00> : vector<16x256xf32>
    %2 = tpu.matmul %1, %0, %cst {dimension_numbers = #tpu.dot_dimension_numbers<[1], [0], [0], [1], [0, 0, 1, 1], [], []>} : vector<16x48xf32>, vector<48x256xf32>, vector<16x256xf32> -> vector<16x256xf32>
    %c0_3 = arith.constant 0 : index
    %c0_4 = arith.constant 0 : index
    %3 = vector.load %arg6[%c0_3, %c0_4] : memref<16x256xf32, #tpu.memory_space<vmem>>, vector<16x256xf32>
    tpu.vector_store %arg6[%c0_3, %c0_4], %2 {strides = array<i32>} : memref<16x256xf32, #tpu.memory_space<vmem>>, vector<16x256xf32>,
    %c0_5 = arith.constant 0 : index
    %c0_6 = arith.constant 0 : index
    %4 = vector.load %arg3[%c0_5, %c0_6] : memref<64x384xf32, #tpu.memory_space<vmem>>, vector<64x384xf32>
    %c0_7 = arith.constant 0 : index
    %c0_8 = arith.constant 0 : index
    %5 = vector.load %arg4[%c0_7, %c0_8] : memref<1x384xf32, #tpu.memory_space<vmem>>, vector<1x384xf32>
    %c0_9 = arith.constant 0 : index
    %c0_10 = arith.constant 0 : index
    %6 = vector.load %arg6[%c0_9, %c0_10] : memref<16x256xf32, #tpu.memory_space<vmem>>, vector<16x64xf32>
    %cst_11 = arith.constant dense<0.000000e+00> : vector<16x384xf32>
    %7 = tpu.matmul %6, %4, %cst_11 {dimension_numbers = #tpu.dot_dimension_numbers<[1], [0], [0], [1], [0, 0, 1, 1], [], []>} : vector<16x64xf32>, vector<64x384xf32>, vector<16x384xf32> -> vector<16x384xf32>
    %8 = vector.broadcast %5 : vector<1x384xf32> to vector<16x384xf32>
    %9 = arith.addf %7, %8 : vector<16x384xf32>
    %c0_12 = arith.constant 0 : index
    %c0_13 = arith.constant 0 : index
    %10 = vector.load %arg5[%c0_12, %c0_13] : memref<16x1536xf32, #tpu.memory_space<vmem>>, vector<16x384xf32>
    tpu.vector_store %arg5[%c0_12, %c0_13], %9 {strides = array<i32>} : memref<16x1536xf32, #tpu.memory_space<vmem>>, vector<16x384xf32>,
    %c0_14 = arith.constant 0 : index
    %c64 = arith.constant 64 : index
    %11 = vector.load %arg6[%c0_14, %c64] : memref<16x256xf32, #tpu.memory_space<vmem>>, vector<16x64xf32>
    %cst_15 = arith.constant dense<0.000000e+00> : vector<16x384xf32>
    %12 = tpu.matmul %11, %4, %cst_15 {dimension_numbers = #tpu.dot_dimension_numbers<[1], [0], [0], [1], [0, 0, 1, 1], [], []>} : vector<16x64xf32>, vector<64x384xf32>, vector<16x384xf32> -> vector<16x384xf32>
    %13 = vector.broadcast %5 : vector<1x384xf32> to vector<16x384xf32>
    %14 = arith.addf %12, %13 : vector<16x384xf32>
    %c0_16 = arith.constant 0 : index
    %c384 = arith.constant 384 : index
    %15 = vector.load %arg5[%c0_16, %c384] : memref<16x1536xf32, #tpu.memory_space<vmem>>, vector<16x384xf32>
    tpu.vector_store %arg5[%c0_16, %c384], %14 {strides = array<i32>} : memref<16x1536xf32, #tpu.memory_space<vmem>>, vector<16x384xf32>,
    %c0_17 = arith.constant 0 : index
    %c128 = arith.constant 128 : index
    %16 = vector.load %arg6[%c0_17, %c128] : memref<16x256xf32, #tpu.memory_space<vmem>>, vector<16x64xf32>
    %cst_18 = arith.constant dense<0.000000e+00> : vector<16x384xf32>
    %17 = tpu.matmul %16, %4, %cst_18 {dimension_numbers = #tpu.dot_dimension_numbers<[1], [0], [0], [1], [0, 0, 1, 1], [], []>} : vector<16x64xf32>, vector<64x384xf32>, vector<16x384xf32> -> vector<16x384xf32>
    %18 = vector.broadcast %5 : vector<1x384xf32> to vector<16x384xf32>
    %19 = arith.addf %17, %18 : vector<16x384xf32>
    %c0_19 = arith.constant 0 : index
    %c768 = arith.constant 768 : index
    %20 = vector.load %arg5[%c0_19, %c768] : memref<16x1536xf32, #tpu.memory_space<vmem>>, vector<16x384xf32>
    tpu.vector_store %arg5[%c0_19, %c768], %19 {strides = array<i32>} : memref<16x1536xf32, #tpu.memory_space<vmem>>, vector<16x384xf32>,
    %c0_20 = arith.constant 0 : index
    %c192 = arith.constant 192 : index
    %21 = vector.load %arg6[%c0_20, %c192] : memref<16x256xf32, #tpu.memory_space<vmem>>, vector<16x64xf32>
    %cst_21 = arith.constant dense<0.000000e+00> : vector<16x384xf32>
    %22 = tpu.matmul %21, %4, %cst_21 {dimension_numbers = #tpu.dot_dimension_numbers<[1], [0], [0], [1], [0, 0, 1, 1], [], []>} : vector<16x64xf32>, vector<64x384xf32>, vector<16x384xf32> -> vector<16x384xf32>
    %23 = vector.broadcast %5 : vector<1x384xf32> to vector<16x384xf32>
    %24 = arith.addf %22, %23 : vector<16x384xf32>
    %c0_22 = arith.constant 0 : index
    %c1152 = arith.constant 1152 : index
    %25 = vector.load %arg5[%c0_22, %c1152] : memref<16x1536xf32, #tpu.memory_space<vmem>>, vector<16x384xf32>
    tpu.vector_store %arg5[%c0_22, %c1152], %24 {strides = array<i32>} : memref<16x1536xf32, #tpu.memory_space<vmem>>, vector<16x384xf32>,
    return
  }
  func.func @transform_0(%arg0: i32) -> (i32, i32) {
    %c0_i32 = arith.constant 0 : i32
    %c0_i32_0 = arith.constant 0 : i32
    return %c0_i32, %arg0 : i32, i32
  }
  func.func @transform_1(%arg0: i32) -> (i32, i32) {
    %c0_i32 = arith.constant 0 : i32
    %c0_i32_0 = arith.constant 0 : i32
    %c0_i32_1 = arith.constant 0 : i32
    return %c0_i32, %c0_i32_0 : i32, i32
  }
  func.func @transform_2(%arg0: i32) -> (i32, i32) {
    %c0_i32 = arith.constant 0 : i32
    %c0_i32_0 = arith.constant 0 : i32
    %c0_i32_1 = arith.constant 0 : i32
    return %c0_i32, %c0_i32_0 : i32, i32
  }
  func.func @transform_3(%arg0: i32) -> (i32, i32) {
    %c0_i32 = arith.constant 0 : i32
    %c0_i32_0 = arith.constant 0 : i32
    %c0_i32_1 = arith.constant 0 : i32
    return %c0_i32, %c0_i32_0 : i32, i32
  }
  func.func @transform_4(%arg0: i32) -> (i32, i32) {
    %c0_i32 = arith.constant 0 : i32
    %c0_i32_0 = arith.constant 0 : i32
    return %c0_i32, %arg0 : i32, i32
  }
}

</mosaic_0001>

<bundles_post_ra>
// kernel: tpu_custom_call.1
= control target key start
LH: loop header
LB: loop body
LE: loop exit
PB: predicated region body
PF: predicated region fallthrough
CT: control target
= control target key end

     0   :  { %9 = vsyncpa [#allocation4], 0  ;;  %s1511_s0 = inlined_call_operand.hbm [shape: f32[48,256], index: 0, kind: input, shape index: {}]   ;;  %s1512_s1 = inlined_call_operand.hbm [shape: f32[16,48], index: 1, kind: input, shape index: {}]   ;;  %s1513_s2 = inlined_call_operand.hbm [shape: f32[64,384], index: 2, kind: input, shape index: {}]   ;;  %s1514_s3 = inlined_call_operand.vmem [shape: f32[1,384], index: 3, kind: input, shape index: {}]   ;;  %s1515_s4 = inlined_call_operand.hbm [shape: f32[16,1536], index: 4, kind: output, shape index: {}]  }
   0x1   :  { %10 = vsyncpa [#allocation7], 0 }
   0x2   :  { %11 = vsyncpa [#allocation5], 0  ;;  %s1275_s15 = smov [#allocation6]   ;;  %s1181_s19 = scalar_lea.hbm %s1512_s1, 256 }
   0x3   :  { %s29_s16 = sshll.u32 %s1275_s15, 4  ;;  %p1182_p0 = scmp.ne.s32.totalorder %s1512_s1, %s1181_s19  ;;  %s30_s16 = int_to_ptr.vmem [resolvable:$true] %s29_s16 }
   0x4   :  { %p1185_p1 = scmp.lt.u32.totalorder %s1181_s19, %s1512_s1 }
   0x6   :  { %p1187_p2 = pnand %p1185_p1, %p1182_p0 }
   0x8   :  { %1190 = shalt.err (!%p1187_p2)
}
   0x9   :  { %s1191_s24 = scalar_lea.vmem %s30_s16, 256  ;;  %p1196_p4 = scmp.lt.s32.totalorder %s30_s16, %s30_s16 }
   0xa   :  { %p1192_p3 = scmp.ne.s32.totalorder %s30_s16, %s1191_s24  ;;  %p1197_p5 = scmp.lt.s32.totalorder %s1191_s24, %s1191_s24 }
   0xc   :  { %p1198_p6 = por %p1197_p5, %p1196_p4 }
   0xe   :  { %p1199_p7 = pnand %p1198_p6, %p1192_p3 }
  0x10   :  { %1202 = shalt.err (!%p1199_p7)
}
  0x11   :  { %s1276_s25 = smov 128   ;;  %s1277_s26 = smov 8  }
  0x12   :  { %35 = dma.hbm_to_vmem [thread:$0]  %s1512_s1, 256, %s30_s16, [#allocation7], %s1276_s25, %s1276_s25, %s1277_s26  }
  0x13   :  { %s1278_s29 = smov [#allocation3]   ;;  %s1203_s7 = scalar_lea.hbm %s1511_s0, 1536 }
  0x14   :  { %s17_s30 = sshll.u32 %s1278_s29, 4  ;;  %p1204_p8 = scmp.ne.s32.totalorder %s1511_s0, %s1203_s7  ;;  %s18_s30 = int_to_ptr.vmem [resolvable:$true] %s17_s30 }
  0x15   :  { %p1207_p9 = scmp.lt.u32.totalorder %s1203_s7, %s1511_s0 }
  0x17   :  { %p1209_p10 = pnand %p1207_p9, %p1204_p8 }
  0x19   :  { %1212 = shalt.err (!%p1209_p10)
}
  0x1a   :  { %s1213_s12 = scalar_lea.vmem %s18_s30, 1536  ;;  %p1218_p12 = scmp.lt.s32.totalorder %s18_s30, %s18_s30 }
  0x1b   :  { %p1214_p11 = scmp.ne.s32.totalorder %s18_s30, %s1213_s12  ;;  %p1219_p13 = scmp.lt.s32.totalorder %s1213_s12, %s1213_s12 }
  0x1d   :  { %p1220_p0 = por %p1219_p13, %p1218_p12 }
  0x1f   :  { %p1221_p1 = pnand %p1220_p0, %p1214_p11 }
  0x21   :  { %1224 = shalt.err (!%p1221_p1)
}
  0x22   :  { %s1279_s1 = smov 256   ;;  %s1280_s13 = smov 16  }
  0x23   :  { %23 = dma.hbm_to_vmem [thread:$0]  %s1511_s0, 1536, %s18_s30, [#allocation4], %s1279_s1, %s1279_s1, %s1280_s13  }
  0x24   :  { %s1281_s16 = smov [#allocation8]   ;;  %s1225_s20 = scalar_lea.hbm %s1513_s2, 3072 }
  0x25   :  { %s41_s17 = sshll.u32 %s1281_s16, 4  ;;  %p1226_p2 = scmp.ne.s32.totalorder %s1513_s2, %s1225_s20  ;;  %s42_s17 = int_to_ptr.vmem [resolvable:$true] %s41_s17 }
  0x26   :  { %p1229_p3 = scmp.lt.u32.totalorder %s1225_s20, %s1513_s2 }
  0x28   :  { %p1231_p4 = pnand %p1229_p3, %p1226_p2 }
  0x2a   :  { %1234 = shalt.err (!%p1231_p4)
}
  0x2b   :  { %s1235_s25 = scalar_lea.vmem %s42_s17, 3072  ;;  %p1240_p6 = scmp.lt.s32.totalorder %s42_s17, %s42_s17 }
  0x2c   :  { %p1236_p5 = scmp.ne.s32.totalorder %s42_s17, %s1235_s25  ;;  %p1241_p7 = scmp.lt.s32.totalorder %s1235_s25, %s1235_s25 }
  0x2e   :  { %p1242_p8 = por %p1241_p7, %p1240_p6 }
  0x30   :  { %p1243_p9 = pnand %p1242_p8, %p1236_p5 }
  0x32   :  { %1246 = shalt.err (!%p1243_p9)
}
  0x33   :  { %s1282_s0 = smov 384   ;;  %s1283_s26 = smov 24  }
  0x34   :  { %47 = dma.hbm_to_vmem [thread:$0]  %s1513_s2, 3072, %s42_s17, [#allocation7], %s1282_s0, %s1282_s0, %s1283_s26  }
  0x35   :  { %1269 = dma.done.wait [#allocation4], 1536  }
  0x36   :  { %1270 = vsyncadd [#allocation4], 4294965760 }
  0x37   :  { %1271 = dma.done.wait [#allocation7], 3328  }
  0x38   :  { %1272 = vsyncadd [#allocation7], 4294963968  ;;  %v1284_v0 = vmov 0.0   ;;  %v60_v1 = vld [vmem:[#allocation3 + $0x8] sm:$0xff]  ;;  %v62_v2 = vld [vmem:[#allocation3 + $0x18] sm:$0xff]  ;;  %vm73_vm0 = vcmask 392192  }
  0x39   :  { %144 = vmatprep.mubr.f32.mxu0 %v1284_v0  ;;  %275 = vmatprep.mubr.f32.mxu1 %v1284_v0  ;;  %v59_v3 = vld [vmem:[#allocation3] sm:$0xff]  ;;  %v1027_v4 = vpack.c.bf16 %v62_v2, %v60_v1  ;;  %v61_v5 = vld [vmem:[#allocation3 + $0x10] sm:$0xff]  ;;  %v64_v6 = vld [vmem:[#allocation3 + $0x28] sm:$0xff]  ;;  %vm204_vm1 = vcmask 523264   ;;  %s1285_s2 = smov 64   ;;  %v189_v2 = vlaneseq }
  0x3a   :  { %v66_v7 = vld [vmem:[#allocation3 + $0x38] sm:$0xff]  ;;  %v1029_v8 = vpack.c.bf16 %v61_v5, %v59_v3  ;;  %v63_v10 = vld [vmem:[#allocation3 + $0x20] sm:$0xff]  ;;  %v65_v11 = vld [vmem:[#allocation3 + $0x30] sm:$0xff] }
  0x3b   :  { %v1031_v9 = vpack.c.bf16 %v66_v7, %v64_v6  ;;  %v68_v12 = vld [vmem:[#allocation3 + $0x48] sm:$0xff]  ;;  %1028 = vmatprep.subr.bf16.mxu0 %v1027_v4  ;;  %v70_v13 = vld [vmem:[#allocation3 + $0x58] sm:$0xff]  ;;  %v1033_v14 = vpack.c.bf16 %v65_v11, %v63_v10  ;;  %v67_v15 = vld [vmem:[#allocation3 + $0x40] sm:$0xff]  ;;  %v190_v3 = vshrl.u32 %v189_v2, 7 }
  0x3c   :  { %1030 = vmatpush1.bf16.msra.mxu0 %v1029_v8  ;;  %v69_v16 = vld [vmem:[#allocation3 + $0x50] sm:$0xff]  ;;  %v162_v17 = vld [vmem:[#allocation8 + $0x8] sm:$0xff]  ;;  %v1035_v18 = vpack.c.bf16 %v70_v13, %v68_v12  ;;  %v164_v21 = vld [vmem:[#allocation8 + $0x18] sm:$0xff] }
  0x3d   :  { %1032 = vmatprep.subr.bf16.mxu0 %v1031_v9  ;;  %v165_v19 = vld [vmem:[#allocation8 + $0x20] sm:$0xff]  ;;  %v168_v24 = vld [vmem:[#allocation8 + $0x38] sm:$0xff]  ;;  %v171_v25 = vld [vmem:[#allocation8 + $0x50] sm:$0xff]  ;;  %v1037_v31 = vpack.c.bf16 %v69_v16, %v67_v15  ;;  %v191_v4 = vsub.s32 0, %v190_v3  ;;  %v195_v6 = vsub.s32 1, %v190_v3  ;;  %v199_v9 = vsub.s32 2, %v190_v3 }
  0x3e   :  { %v161_v20 = vld [vmem:[#allocation8] sm:$0xff]  ;;  %v1352_v22 = vpack.c.bf16 %v165_v19, %v162_v17  ;;  %v163_v26 = vld [vmem:[#allocation8 + $0x10] sm:$0xff]  ;;  %v1356_v27 = vpack.c.bf16 %v171_v25, %v168_v24  ;;  %v166_v28 = vld [vmem:[#allocation8 + $0x28] sm:$0xff] }
  0x3f   :  { %v1354_v23 = vpack.c.bf16 %v164_v21, %v161_v20  ;;  %v167_v29 = vld [vmem:[#allocation8 + $0x30] sm:$0xff]  ;;  %v170_v30 = vld [vmem:[#allocation8 + $0x48] sm:$0xff]  ;;  %v177_v33 = vld [vmem:[#allocation8 + $0x80] sm:$0xff]  ;;  %v1360_v34 = vpack.c.bf16 %v166_v28, %v163_v26 }
  0x40   :  { %1034 = vmatpush1.bf16.msra.mxu0 %v1033_v14  ;;  %1040 = vmatprep.subr.bf16.mxu1 %v1352_v22  ;;  %v174_v32 = vld [vmem:[#allocation8 + $0x68] sm:$0xff]  ;;  %v1362_v35 = vpack.c.bf16 %v170_v30, %v167_v29  ;;  %v169_v36 = vld [vmem:[#allocation8 + $0x40] sm:$0xff]  ;;  %v172_v38 = vld [vmem:[#allocation8 + $0x58] sm:$0xff] }
  0x41   :  { %1036 = vmatprep.subr.bf16.mxu0 %v1035_v18  ;;  %1042 = vmatpush1.bf16.msra.mxu1 %v1354_v23  ;;  %v1365_v37 = vpack.c.bf16 %v177_v33, %v174_v32  ;;  %v173_v39 = vld [vmem:[#allocation8 + $0x60] sm:$0xff]  ;;  %v176_v40 = vld [vmem:[#allocation8 + $0x78] sm:$0xff]  ;;  %v183_v42 = vld [vmem:[#allocation8 + $0xb0] sm:$0xff]  ;;  %v1369_v44 = vpack.c.bf16 %v172_v38, %v169_v36 }
  0x42   :  { %1044 = vmatprep.subr.bf16.mxu1 %v1356_v27  ;;  %v180_v41 = vld [vmem:[#allocation8 + $0x98] sm:$0xff]  ;;  %v71_v43 = vld [vmem:[#allocation6] sm:$0xff]  ;;  %v1371_v45 = vpack.c.bf16 %v176_v40, %v173_v39  ;;  %v178_v48 = vld [vmem:[#allocation8 + $0x88] sm:$0xff] }
  0x43   :  { %v175_v46 = vld [vmem:[#allocation8 + $0x70] sm:$0xff]  ;;  %v1374_v47 = vpack.c.bf16 %v183_v42, %v180_v41  ;;  %v182_v50 = vld [vmem:[#allocation8 + $0xa8] sm:$0xff]  ;;  %v72_v51 = vld [vmem:[#allocation6 + $0x8] sm:$0xff] }
  0x44   :  { %1038 = vmatpush1.bf16.msra.mxu0 %v1037_v31  ;;  %v179_v49 = vld [vmem:[#allocation8 + $0x90] sm:$0xff]  ;;  %v1381_v52 = vpack.c.bf16 %v178_v48, %v175_v46  ;;  %v181_v54 = vld [vmem:[#allocation8 + $0xa0] sm:$0xff]  ;;  %v184_v55 = vld [vmem:[#allocation8 + $0xb8] sm:$0xff] }
  0x45   :  { %1056 = vmatprep.subr.bf16.mxu0 %v1360_v34  ;;  %1046 = vmatpush1.bf16.msra.mxu1 %v1362_v35  ;;  %v1383_v53 = vpack.c.bf16 %v182_v50, %v179_v49  ;;  %v1392_v56 = vpack.c.bf16 %v184_v55, %v181_v54  ;;  %v185_v5 = vld [vmem:[%s1514_s3] sm:$0x7]  ;;  %s1286_s3 = smov [#allocation9]  }
  0x46   :  { %1048 = vmatprep.subr.bf16.mxu1 %v1365_v37  ;;  %v1469_v7 = vrot.slane %v185_v5, %v191_v4  ;;  %v1471_v8 = vrot.slane %v185_v5, %v195_v6  ;;  %v1475_v13 = vrot.slane %v185_v5, %v199_v9  ;;  %s880_s5 = sshll.u32 %s1286_s3, 4  ;;  %s881_s5 = int_to_ptr.vmem [resolvable:$true] %s880_s5 }
  0x47   :  { %893 = vmatmul.mubr.msk.f32.vlgmr.msra.gmra.mrb[0].mxu0 %vm73_vm0, %v71_v43  ;;  %s1247_s6 = scalar_lea.vmem %s881_s5, 3072  ;;  %p1252_p11 = scmp.lt.s32.totalorder %s881_s5, %s881_s5 }
  0x48   :  { %150 = vmatprep.mubr.f32.mxu0 %v1284_v0  ;;  %1058 = vmatpush3.bf16.msra.mxu0 %v1360_v34  ;;  %p1248_p10 = scmp.ne.s32.totalorder %s881_s5, %s1247_s6  ;;  %p1253_p12 = scmp.lt.s32.totalorder %s1247_s6, %s1247_s6 }
  0x49   :  { %1060 = vmatprep.subr.bf16.mxu0 %v1369_v44  ;;  %1050 = vmatpush1.bf16.msra.mxu1 %v1371_v45 }
  0x4a   :  { %1052 = vmatprep.subr.bf16.mxu1 %v1374_v47  ;;  %p1254_p13 = por %p1253_p12, %p1252_p11 }
  0x4b   :  { %894 = vmatmul.mubr.msk.f32.gmra.mrb[2].mxu0 %vm73_vm0, %v72_v51 }
  0x4c   :  { %1062 = vmatpush3.bf16.msra.mxu0 %v1369_v44  ;;  %p1255_p0 = pnand %p1254_p13, %p1248_p10 }
  0x4d   :  { %1064 = vmatprep.subr.bf16.mxu0 %v1381_v52  ;;  %1054 = vmatpush1.bf16.msra.mxu1 %v1383_v53 }
  0x4e   :  { %1072 = vmatprep.subr.bf16.mxu1 %v1352_v22 }
  0x50   :  { %1066 = vmatpush3.bf16.msra.mxu0 %v1381_v52 }
  0x51   :  { %1068 = vmatprep.subr.bf16.mxu0 %v1392_v56 }
  0x54   :  { %1070 = vmatpush3.bf16.msra.mxu0 %v1392_v56 }
  0x55   :  { %1088 = vmatprep.subr.bf16.mxu0 %v1360_v34 }
 0x11a   :  { %v146_v57 = vpop.f32.mrb[0].mxu0 }
 0x11b   :  { %373 = vrot.lane.b32.xlu0 %v146_v57, %s1285_s2  ;;  %v148_v58 = vpop.f32.mrb[1].mxu0  ;;  %895 = vmatmul.mubr.msk.f32.vlgmr.msra.gmra.mrb[0].mxu1 %vm204_vm1, %v146_v57 }
 0x11c   :  { %967 = vmatprep.mubr.msk.f32.mxu0 %vm204_vm1, %v146_v57  ;;  %709 = vrot.lane.b32.xlu1 %v148_v58, %s1285_s2 }
 0x11d   :  { %281 = vmatprep.mubr.f32.mxu1 %v1284_v0  ;;  %1074 = vmatpush1.bf16.msra.mxu1 %v1354_v23 }
 0x11e   :  { %v152_v59 = vpop.f32.mrb[2].mxu0  ;;  %1076 = vmatprep.subr.bf16.mxu1 %v1356_v27 }
 0x11f   :  { %375 = vrot.lane.b32.xlu0 %v152_v59, %s1285_s2  ;;  %v154_v60 = vpop.f32.mrb[3].mxu0  ;;  %896 = vmatmul.mubr.msk.f32.gmra.mrb[2].mxu1 %vm204_vm1, %v152_v59 }
 0x120   :  { %968 = vmatmul.mubr.msk.f32.vlgmr.msra.gmra.mrb[4].mxu0 %vm204_vm1, %v152_v59  ;;  %711 = vrot.lane.b32.xlu1 %v154_v60, %s1285_s2 }
 0x121   :  { %1078 = vmatpush1.bf16.msra.mxu1 %v1362_v35  ;;  %1090 = vmatpush3.bf16.msra.mxu0 %v1360_v34 }
 0x122   :  { %1080 = vmatprep.subr.bf16.mxu1 %v1365_v37  ;;  %1092 = vmatprep.subr.bf16.mxu0 %v1369_v44 }
 0x123   :  { %445 = vmatprep.mubr.f32.mxu1 %v1284_v0 }
 0x125   :  { %1082 = vmatpush1.bf16.msra.mxu1 %v1371_v45  ;;  %1094 = vmatpush3.bf16.msra.mxu0 %v1369_v44 }
 0x126   :  { %1084 = vmatprep.subr.bf16.mxu1 %v1374_v47  ;;  %1096 = vmatprep.subr.bf16.mxu0 %v1381_v52 }
 0x129   :  { %1086 = vmatpush1.bf16.msra.mxu1 %v1383_v53  ;;  %1098 = vmatpush3.bf16.msra.mxu0 %v1381_v52 }
 0x12a   :  { %1100 = vmatprep.subr.bf16.mxu0 %v1392_v56  ;;  %1104 = vmatprep.subr.bf16.mxu1 %v1352_v22 }
 0x12d   :  { %1102 = vmatpush3.bf16.msra.mxu0 %v1392_v56 }
 0x12e   :  { %1120 = vmatprep.subr.bf16.mxu0 %v1360_v34 }
 0x18d   :  { %v374_v61 = vpop.permute.xlu0 %373 }
 0x18e   :  { %899 = vmatmul.mubr.msk.f32.vlgmr.msra.gmra.mrb[4].mxu1 %vm204_vm1, %v374_v61  ;;  %986 = vmatprep.mubr.msk.f32.mxu0 %vm204_vm1, %v374_v61  ;;  %v710_v63 = vpop.permute.xlu1 %709 }
 0x18f   :  { %1106 = vmatpush1.bf16.msra.mxu1 %v1354_v23  ;;  %451 = vmatprep.mubr.f32.mxu1 %v1284_v0 }
 0x190   :  { %1108 = vmatprep.subr.bf16.mxu1 %v1356_v27 }
 0x191   :  { %v376_v62 = vpop.permute.xlu0 %375 }
 0x192   :  { %900 = vmatmul.mubr.msk.f32.gmra.mrb[6].mxu1 %vm204_vm1, %v376_v62  ;;  %987 = vmatmul.mubr.msk.f32.vlgmr.msra.gmra.mrb[6].mxu0 %vm204_vm1, %v376_v62  ;;  %v712_v1 = vpop.permute.xlu1 %711 }
 0x193   :  { %1110 = vmatpush1.bf16.msra.mxu1 %v1362_v35  ;;  %1122 = vmatpush3.bf16.msra.mxu0 %v1360_v34 }
 0x194   :  { %1005 = vmatprep.mubr.msk.f32.mxu0 %vm204_vm1, %v148_v58  ;;  %1112 = vmatprep.subr.bf16.mxu1 %v1365_v37 }
 0x195   :  { %1124 = vmatprep.subr.bf16.mxu0 %v1369_v44  ;;  %611 = vmatprep.mubr.f32.mxu1 %v1284_v0 }
 0x197   :  { %1114 = vmatpush1.bf16.msra.mxu1 %v1371_v45  ;;  %1126 = vmatpush3.bf16.msra.mxu0 %v1369_v44 }
 0x198   :  { %1116 = vmatprep.subr.bf16.mxu1 %v1374_v47  ;;  %1128 = vmatprep.subr.bf16.mxu0 %v1381_v52 }
 0x19b   :  { %1118 = vmatpush1.bf16.msra.mxu1 %v1383_v53  ;;  %1130 = vmatpush3.bf16.msra.mxu0 %v1381_v52 }
 0x19c   :  { %1132 = vmatprep.subr.bf16.mxu0 %v1392_v56  ;;  %1136 = vmatprep.subr.bf16.mxu1 %v1352_v22 }
 0x19e   :  { %903 = vmatmul.mubr.msk.f32.vlgmr.msra.gmra.mrb[8].mxu1 %vm204_vm1, %v148_v58 }
 0x19f   :  { %1134 = vmatpush3.bf16.msra.mxu0 %v1392_v56  ;;  %1138 = vmatpush1.bf16.msra.mxu1 %v1354_v23 }
 0x1a0   :  { %617 = vmatprep.mubr.f32.mxu1 %v1284_v0  ;;  %1140 = vmatprep.subr.bf16.mxu1 %v1356_v27 }
 0x1a1   :  { %1152 = vmatprep.subr.bf16.mxu0 %v1360_v34 }
 0x1a2   :  { %904 = vmatmul.mubr.msk.f32.gmra.mrb[10].mxu1 %vm204_vm1, %v154_v60  ;;  %1006 = vmatmul.mubr.msk.f32.vlgmr.msra.gmra.mrb[8].mxu0 %vm204_vm1, %v154_v60 }
 0x1a3   :  { %1142 = vmatpush1.bf16.msra.mxu1 %v1362_v35  ;;  %1154 = vmatpush3.bf16.msra.mxu0 %v1360_v34 }
 0x1a4   :  { %1024 = vmatprep.mubr.msk.f32.mxu0 %vm204_vm1, %v710_v63  ;;  %1144 = vmatprep.subr.bf16.mxu1 %v1365_v37 }
 0x1a5   :  { %1156 = vmatprep.subr.bf16.mxu0 %v1369_v44  ;;  %781 = vmatprep.mubr.f32.mxu1 %v1284_v0 }
 0x1a7   :  { %1146 = vmatpush1.bf16.msra.mxu1 %v1371_v45  ;;  %1158 = vmatpush3.bf16.msra.mxu0 %v1369_v44 }
 0x1a8   :  { %1148 = vmatprep.subr.bf16.mxu1 %v1374_v47  ;;  %1160 = vmatprep.subr.bf16.mxu0 %v1381_v52 }
 0x1ab   :  { %1150 = vmatpush1.bf16.msra.mxu1 %v1383_v53  ;;  %1162 = vmatpush3.bf16.msra.mxu0 %v1381_v52 }
 0x1ac   :  { %1164 = vmatprep.subr.bf16.mxu0 %v1392_v56 }
 0x1ae   :  { %907 = vmatmul.mubr.msk.f32.vlgmr.msra.gmra.mrb[12].mxu1 %vm204_vm1, %v710_v63 }
 0x1af   :  { %1166 = vmatpush3.bf16.msra.mxu0 %v1392_v56  ;;  %787 = vmatprep.mubr.f32.mxu1 %v1284_v0 }
 0x1b2   :  { %908 = vmatmul.mubr.msk.f32.gmra.mrb[14].mxu1 %vm204_vm1, %v712_v1  ;;  %1025 = vmatmul.mubr.msk.f32.vlgmr.msra.gmra.mrb[10].mxu0 %vm204_vm1, %v712_v1 }
 0x1ee   :  { %v277_v10 = vpop.f32.mrb[0].mxu1 }
 0x1ef   :  { %v278_v0 = vadd.f32 %v277_v10, %v1469_v7  ;;  %v279_v11 = vpop.f32.mrb[1].mxu1 }
 0x1f0   :  { %v280_v12 = vadd.f32 %v279_v11, %v1471_v8 }
 0x1f1   :  { %363 = vst [vmem:[#allocation9] sm:$0xff] %v278_v0 }
 0x1f2   :  { %364 = vst [vmem:[#allocation9 + $0x8] sm:$0xff] %v280_v12  ;;  %v283_v14 = vpop.f32.mrb[2].mxu1 }
 0x1f3   :  { %v284_v15 = vadd.f32 %v283_v14, %v1469_v7  ;;  %v969_v16 = vpop.f32.mrb[4].mxu0  ;;  %v285_v17 = vpop.f32.mrb[3].mxu1 }
 0x1f4   :  { %v360_v18 = vadd.f32 %v969_v16, %v1475_v13  ;;  %v286_v19 = vadd.f32 %v285_v17, %v1471_v8  ;;  %v354_v20 = vpop.f32.mrb[5].mxu0 }
 0x1f5   :  { %366 = vst [vmem:[#allocation9 + $0x60] sm:$0xff] %v284_v15  ;;  %v355_v21 = vadd.f32 %v354_v20, %v1475_v13 }
 0x1f6   :  { %368 = vst [vmem:[#allocation9 + $0x70] sm:$0xff] %v360_v18  ;;  %367 = vst [vmem:[#allocation9 + $0x68] sm:$0xff] %v286_v19 }
 0x1f7   :  { %365 = vst [vmem:[#allocation9 + $0x10] sm:$0xff] %v355_v21 }
 0x261   :  { %v447_v22 = vpop.f32.mrb[4].mxu1 }
 0x262   :  { %v448_v23 = vadd.f32 %v447_v22, %v1469_v7  ;;  %v449_v24 = vpop.f32.mrb[5].mxu1 }
 0x263   :  { %v450_v25 = vadd.f32 %v449_v24, %v1471_v8 }
 0x264   :  { %533 = vst [vmem:[#allocation9 + $0x18] sm:$0xff] %v448_v23 }
 0x265   :  { %534 = vst [vmem:[#allocation9 + $0x20] sm:$0xff] %v450_v25  ;;  %v453_v26 = vpop.f32.mrb[6].mxu1  ;;  %v988_v27 = vpop.f32.mrb[6].mxu0 }
 0x266   :  { %v454_v28 = vadd.f32 %v453_v26, %v1469_v7  ;;  %v530_v29 = vadd.f32 %v988_v27, %v1475_v13  ;;  %v455_v30 = vpop.f32.mrb[7].mxu1  ;;  %v524_v31 = vpop.f32.mrb[7].mxu0 }
 0x267   :  { %v456_v32 = vadd.f32 %v455_v30, %v1471_v8  ;;  %v525_v33 = vadd.f32 %v524_v31, %v1475_v13 }
 0x268   :  { %536 = vst [vmem:[#allocation9 + $0x78] sm:$0xff] %v454_v28  ;;  %538 = vst [vmem:[#allocation9 + $0x88] sm:$0xff] %v530_v29 }
 0x269   :  { %537 = vst [vmem:[#allocation9 + $0x80] sm:$0xff] %v456_v32  ;;  %535 = vst [vmem:[#allocation9 + $0x28] sm:$0xff] %v525_v33 }
 0x271   :  { %v613_v34 = vpop.f32.mrb[8].mxu1 }
 0x272   :  { %v614_v35 = vadd.f32 %v613_v34, %v1469_v7  ;;  %v615_v36 = vpop.f32.mrb[9].mxu1 }
 0x273   :  { %v616_v37 = vadd.f32 %v615_v36, %v1471_v8 }
 0x274   :  { %699 = vst [vmem:[#allocation9 + $0x30] sm:$0xff] %v614_v35 }
 0x275   :  { %700 = vst [vmem:[#allocation9 + $0x38] sm:$0xff] %v616_v37  ;;  %v619_v38 = vpop.f32.mrb[10].mxu1  ;;  %v1007_v39 = vpop.f32.mrb[8].mxu0 }
 0x276   :  { %v620_v40 = vadd.f32 %v619_v38, %v1469_v7  ;;  %v696_v41 = vadd.f32 %v1007_v39, %v1475_v13  ;;  %v621_v42 = vpop.f32.mrb[11].mxu1  ;;  %v690_v43 = vpop.f32.mrb[9].mxu0 }
 0x277   :  { %v622_v44 = vadd.f32 %v621_v42, %v1471_v8  ;;  %v691_v45 = vadd.f32 %v690_v43, %v1475_v13 }
 0x278   :  { %702 = vst [vmem:[#allocation9 + $0x90] sm:$0xff] %v620_v40  ;;  %704 = vst [vmem:[#allocation9 + $0xa0] sm:$0xff] %v696_v41 }
 0x279   :  { %703 = vst [vmem:[#allocation9 + $0x98] sm:$0xff] %v622_v44  ;;  %701 = vst [vmem:[#allocation9 + $0x40] sm:$0xff] %v691_v45 }
 0x281   :  { %v783_v46 = vpop.f32.mrb[12].mxu1 }
 0x282   :  { %v784_v47 = vadd.f32 %v783_v46, %v1469_v7  ;;  %v785_v48 = vpop.f32.mrb[13].mxu1 }
 0x283   :  { %v786_v49 = vadd.f32 %v785_v48, %v1471_v8 }
 0x284   :  { %869 = vst [vmem:[#allocation9 + $0x48] sm:$0xff] %v784_v47 }
 0x285   :  { %870 = vst [vmem:[#allocation9 + $0x50] sm:$0xff] %v786_v49  ;;  %v789_v50 = vpop.f32.mrb[14].mxu1  ;;  %v1026_v51 = vpop.f32.mrb[10].mxu0 }
 0x286   :  { %v790_v52 = vadd.f32 %v789_v50, %v1469_v7  ;;  %v866_v53 = vadd.f32 %v1026_v51, %v1475_v13  ;;  %v791_v54 = vpop.f32.mrb[15].mxu1  ;;  %v860_v55 = vpop.f32.mrb[11].mxu0 }
 0x287   :  { %v792_v56 = vadd.f32 %v791_v54, %v1471_v8  ;;  %v861_v57 = vadd.f32 %v860_v55, %v1475_v13 }
 0x288   :  { %872 = vst [vmem:[#allocation9 + $0xa8] sm:$0xff] %v790_v52  ;;  %874 = vst [vmem:[#allocation9 + $0xb8] sm:$0xff] %v866_v53 }
 0x289   :  { %873 = vst [vmem:[#allocation9 + $0xb0] sm:$0xff] %v792_v56  ;;  %871 = vst [vmem:[#allocation9 + $0x58] sm:$0xff] %v861_v57 }
 0x28a   :  { %1258 = shalt.err (!%p1255_p0)
}
 0x28b   :  { %s1259_s9 = scalar_lea.hbm %s1515_s4, 3072 }
 0x28c   :  { %p1260_p1 = scmp.ne.s32.totalorder %s1515_s4, %s1259_s9  ;;  %p1263_p2 = scmp.lt.u32.totalorder %s1259_s9, %s1515_s4 }
 0x28e   :  { %p1265_p3 = pnand %p1263_p2, %p1260_p1 }
 0x290   :  { %1268 = shalt.err (!%p1265_p3)
}
 0x291   :  { %s1287_s13 = smov 1536   ;;  %s1288_s14 = smov 96  }
 0x292   :  { %886 = dma.vmem_to_hbm [thread:$0]  %s881_s5, 3072, %s1515_s4, [#allocation5], %s1287_s13, %s1287_s13, %s1288_s14  }
 0x293   :  { %1273 = dma.done.wait [#allocation5], 3072  }
 0x294   :  { %1274 = vsyncadd [#allocation5], 4294964224 }
 0x295   :  { %890 = vsyncpa [#allocation4], 1 }
 0x296   :  { %891 = vsyncpa [#allocation7], 1 }
 0x297   :  { %892 = vsyncpa [#allocation5], 1 }

</bundles_post_ra>
